<compile_context>
chip_gen: v7x
topology: tpu7x:2x2x1
jax: 0.10.0
libtpu: 0.0.40
codegen_flags: <defaults>
</compile_context>

<pallas_src>
import jax
import jax.numpy as jnp
from jax.experimental import pallas as pl
from jax.experimental.pallas import tpu as pltpu


def _mlp_kernel(x_ref, w1_ref, b1_ref, w2_ref, b2_ref, out_ref):
    # x:  [TBF, EF] f32 (fold batch rows per folded row) -> bf16 in-kernel
    # w1: [EF, HF] bf16 (block-diagonal)   b1: [1, HF] f32
    # w2: [HF, LF] bf16 (block-diagonal)   b2: [1, LF] f32
    # out:[TBF, LF] f32
    x = x_ref[...].astype(jnp.bfloat16)
    h = jnp.dot(x, w1_ref[...], preferred_element_type=jnp.float32)
    h = jnp.maximum(h + b1_ref[...], 0.0)            # bias + ReLU in f32
    # Dropout: identity (eval mode).
    y = jnp.dot(h.astype(jnp.bfloat16), w2_ref[...],
                preferred_element_type=jnp.float32)
    out_ref[...] = (y + b2_ref[...]).astype(out_ref.dtype)


def gender_classifier_forward(x, w1, b1, w2, b2, *, tb=16384):
    """Forward of GenderClassifier: linear2(relu(linear1(x))).

    x:  [B, E] float32
    w1: [E, H], b1: [H], w2: [H, L], b2: [L]  (weights pre-transposed to
        [in, out] relative to PyTorch nn.Linear's [out, in])
    Returns logits [B, L] float32. `tb` is the batch-tile size in rows.
    """
    B, E = x.shape
    H = w1.shape[1]
    L = w2.shape[1]

    # ---- Lane fold: pack `fold` batch rows into the 128-lane axis ----------
    fold = 128 // E if (E <= 128 and 128 % E == 0) else 1
    b_pad = pl.cdiv(B, fold) * fold
    if b_pad != B:
        # Only when B is not a multiple of `fold` (adds <= fold-1 rows).
        x = jnp.pad(x, ((0, b_pad - B), (0, 0)))
    bf = b_pad // fold                                # folded row count
    EF, HF, LF = fold * E, fold * H, fold * L
    x_fold = x.reshape(bf, EF)                        # free contiguous reshape

    eye = jnp.eye(fold, dtype=w1.dtype)
    w1_bd = jnp.kron(eye, w1).astype(jnp.bfloat16)    # [EF, HF]
    w2_bd = jnp.kron(eye, w2).astype(jnp.bfloat16)    # [HF, LF]
    b1_f = jnp.tile(b1.astype(jnp.float32), fold).reshape(1, HF)
    b2_f = jnp.tile(b2.astype(jnp.float32), fold).reshape(1, LF)

    # ---- Tile sizing --------------------------------------------------------
    tbf = pl.cdiv(max(tb, 8), fold)
    tbf = pl.cdiv(tbf, 8) * 8                         # sublane multiple
    # Keep >= 2 grid steps when the batch allows it (v7x megacore: 2 TCs).
    half = pl.cdiv(pl.cdiv(bf, 2), 8) * 8
    tbf = max(8, min(tbf, half))
    # VMEM clamp: x (f32, 2 bufs) + out (f32, lane-padded, 2 bufs) + h temps.
    row_bytes = 2 * EF * 4 + 2 * max(LF, 128) * 4 + 2 * HF * 4
    budget = 24 * 1024 * 1024                         # headroom under the limit
    tbf = max(8, min(tbf, (budget // row_bytes) // 8 * 8))
    grid = pl.cdiv(bf, tbf)

    cost = pl.CostEstimate(
        flops=2 * bf * EF * HF + 2 * bf * HF * LF,
        transcendentals=0,
        bytes_accessed=(bf * EF * 4            # x read (f32, in-kernel cast)
                        + EF * HF * 2 + HF * 4  # w1 (bf16) + b1 (f32)
                        + HF * LF * 2 + LF * 4  # w2 (bf16) + b2 (f32)
                        + bf * LF * 4),         # logits write (f32)
    )

    out = pl.pallas_call(
        _mlp_kernel,
        out_shape=jax.ShapeDtypeStruct((bf, LF), jnp.float32),
        grid_spec=pltpu.PrefetchScalarGridSpec(
            num_scalar_prefetch=0,
            grid=(grid,),
            in_specs=[
                pl.BlockSpec((tbf, EF), lambda i: (i, 0)),  # x: streamed tiles
                pl.BlockSpec((EF, HF), lambda i: (0, 0)),   # w1: VMEM-resident
                pl.BlockSpec((1, HF), lambda i: (0, 0)),    # b1
                pl.BlockSpec((HF, LF), lambda i: (0, 0)),   # w2
                pl.BlockSpec((1, LF), lambda i: (0, 0)),    # b2
            ],
            out_specs=pl.BlockSpec((tbf, LF), lambda i: (i, 0)),
        ),
        compiler_params=pltpu.CompilerParams(
            dimension_semantics=("parallel",),              # megacore on v7x
            vmem_limit_bytes=40 * 1024 * 1024,              # > v5e's 16 MiB default,
        ),                                                  # < v7x's 64 MiB/TC
        cost_estimate=cost,
    )(x_fold, w1_bd, b1_f, w2_bd, b2_f)

    logits = out.reshape(b_pad, L)
    return logits[:B] if b_pad != B else logits


if __name__ == "__main__":
    embedding_dim = 32
    hidden_dim = 32
    num_labels = 3

    key = jax.random.PRNGKey(0)
    kx, k1, kb1, k2, kb2 = jax.random.split(key, 5)

    # Deterministic params ([in, out] layout, kernel-friendly).
    w1 = (jax.random.normal(k1, (embedding_dim, hidden_dim), dtype=jnp.float32)
          * (1.0 / jnp.sqrt(embedding_dim)))
    b1 = jax.random.normal(kb1, (hidden_dim,), dtype=jnp.float32) * 0.01
    w2 = (jax.random.normal(k2, (hidden_dim, num_labels), dtype=jnp.float32)
          * (1.0 / jnp.sqrt(hidden_dim)))
    b2 = jax.random.normal(kb2, (num_labels,), dtype=jnp.float32) * 0.01

    def ref_bf16(x):   # same bf16-input / f32-accumulate recipe as the kernel
        xb, w1b, w2b = (a.astype(jnp.bfloat16) for a in (x, w1, w2))
        h = jnp.maximum(
            jnp.dot(xb, w1b, preferred_element_type=jnp.float32) + b1, 0.0)
        return jnp.dot(h.astype(jnp.bfloat16), w2b,
                       preferred_element_type=jnp.float32) + b2

    def ref_f32(x):    # full-f32 math (loose tolerance: bf16 rounds at ~2^-8)
        return jnp.maximum(x @ w1 + b1, 0.0) @ w2 + b2

    # batch=32 exercises the exact-fold path; batch=10 exercises the ragged
    # tail (fold pad + partial final block masked by Pallas).
    for batch in (32, 10):
        x = jax.random.normal(kx, (batch, embedding_dim), dtype=jnp.float32)
        out = gender_classifier_forward(x, w1, b1, w2, b2)
        jax.block_until_ready(out)
        assert out.shape == (batch, num_labels)
        assert jnp.allclose(out, ref_bf16(x), atol=1e-2, rtol=1e-2)
        assert jnp.allclose(out, ref_f32(x), atol=5e-2, rtol=5e-2)

    print("KERNEL_OK")
</pallas_src>

<mosaic_0001>
module attributes {stable_mosaic.version = 11 : i64} {
  func.func @_mlp_kernel(%arg0: i32, %arg1: memref<8x128xf32, #tpu.memory_space<vmem>>, %arg2: memref<128x128xbf16, #tpu.memory_space<vmem>>, %arg3: memref<1x128xf32, #tpu.memory_space<vmem>>, %arg4: memref<128x12xbf16, #tpu.memory_space<vmem>>, %arg5: memref<1x12xf32, #tpu.memory_space<vmem>>, %arg6: memref<8x12xf32, #tpu.memory_space<vmem>>) attributes {dimension_semantics = [#tpu.dimension_semantics<parallel>], iteration_bounds = array<i64: 1>, scalar_prefetch = 0 : i64, scratch_operands = 0 : i64, tpu.core_type = #tpu.core_type<tc>, window_params = [{transform_indices = @transform_0, window_bounds = array<i64: 8, 128>}, {pipeline_mode = #tpu.pipeline_mode<synchronous>, transform_indices = @transform_1, window_bounds = array<i64: 128, 128>}, {pipeline_mode = #tpu.pipeline_mode<synchronous>, transform_indices = @transform_2, window_bounds = array<i64: 1, 128>}, {pipeline_mode = #tpu.pipeline_mode<synchronous>, transform_indices = @transform_3, window_bounds = array<i64: 128, 12>}, {pipeline_mode = #tpu.pipeline_mode<synchronous>, transform_indices = @transform_4, window_bounds = array<i64: 1, 12>}, {transform_indices = @transform_5, window_bounds = array<i64: 8, 12>}]} {
    %c0 = arith.constant 0 : index
    %c0_0 = arith.constant 0 : index
    %0 = vector.load %arg1[%c0, %c0_0] : memref<8x128xf32, #tpu.memory_space<vmem>>, vector<8x128xf32>
    %1 = arith.truncf %0 : vector<8x128xf32> to vector<8x128xbf16>
    %c0_1 = arith.constant 0 : index
    %c0_2 = arith.constant 0 : index
    %2 = vector.load %arg2[%c0_1, %c0_2] : memref<128x128xbf16, #tpu.memory_space<vmem>>, vector<128x128xbf16>
    %cst = arith.constant dense<0.000000e+00> : vector<8x128xf32>
    %3 = tpu.matmul %1, %2, %cst {dimension_numbers = #tpu.dot_dimension_numbers<[1], [0], [0], [1], [0, 0, 1, 1], [], []>} : vector<8x128xbf16>, vector<128x128xbf16>, vector<8x128xf32> -> vector<8x128xf32>
    %c0_3 = arith.constant 0 : index
    %c0_4 = arith.constant 0 : index
    %4 = vector.load %arg3[%c0_3, %c0_4] : memref<1x128xf32, #tpu.memory_space<vmem>>, vector<1x128xf32>
    %5 = vector.broadcast %4 : vector<1x128xf32> to vector<8x128xf32>
    %6 = arith.addf %3, %5 : vector<8x128xf32>
    %cst_5 = arith.constant 0.000000e+00 : f32
    %7 = vector.broadcast %cst_5 : f32 to vector<8x128xf32>
    %8 = arith.maximumf %6, %7 : vector<8x128xf32>
    %9 = arith.truncf %8 : vector<8x128xf32> to vector<8x128xbf16>
    %c0_6 = arith.constant 0 : index
    %c0_7 = arith.constant 0 : index
    %10 = vector.load %arg4[%c0_6, %c0_7] : memref<128x12xbf16, #tpu.memory_space<vmem>>, vector<128x12xbf16>
    %cst_8 = arith.constant dense<0.000000e+00> : vector<8x12xf32>
    %11 = tpu.matmul %9, %10, %cst_8 {dimension_numbers = #tpu.dot_dimension_numbers<[1], [0], [0], [1], [0, 0, 1, 1], [], []>} : vector<8x128xbf16>, vector<128x12xbf16>, vector<8x12xf32> -> vector<8x12xf32>
    %c0_9 = arith.constant 0 : index
    %c0_10 = arith.constant 0 : index
    %12 = vector.load %arg5[%c0_9, %c0_10] : memref<1x12xf32, #tpu.memory_space<vmem>>, vector<1x12xf32>
    %13 = vector.broadcast %12 : vector<1x12xf32> to vector<8x12xf32>
    %14 = arith.addf %11, %13 : vector<8x12xf32>
    %c0_11 = arith.constant 0 : index
    %c0_12 = arith.constant 0 : index
    %15 = vector.load %arg6[%c0_11, %c0_12] : memref<8x12xf32, #tpu.memory_space<vmem>>, vector<8x12xf32>
    tpu.vector_store %arg6[%c0_11, %c0_12], %14 {strides = array<i32>} : memref<8x12xf32, #tpu.memory_space<vmem>>, vector<8x12xf32>,
    return
  }
  func.func @transform_0(%arg0: i32) -> (i32, i32) {
    %c0_i32 = arith.constant 0 : i32
    %c0_i32_0 = arith.constant 0 : i32
    return %arg0, %c0_i32 : i32, i32
  }
  func.func @transform_1(%arg0: i32) -> (i32, i32) {
    %c0_i32 = arith.constant 0 : i32
    %c0_i32_0 = arith.constant 0 : i32
    %c0_i32_1 = arith.constant 0 : i32
    return %c0_i32, %c0_i32_0 : i32, i32
  }
  func.func @transform_2(%arg0: i32) -> (i32, i32) {
    %c0_i32 = arith.constant 0 : i32
    %c0_i32_0 = arith.constant 0 : i32
    %c0_i32_1 = arith.constant 0 : i32
    return %c0_i32, %c0_i32_0 : i32, i32
  }
  func.func @transform_3(%arg0: i32) -> (i32, i32) {
    %c0_i32 = arith.constant 0 : i32
    %c0_i32_0 = arith.constant 0 : i32
    %c0_i32_1 = arith.constant 0 : i32
    return %c0_i32, %c0_i32_0 : i32, i32
  }
  func.func @transform_4(%arg0: i32) -> (i32, i32) {
    %c0_i32 = arith.constant 0 : i32
    %c0_i32_0 = arith.constant 0 : i32
    %c0_i32_1 = arith.constant 0 : i32
    return %c0_i32, %c0_i32_0 : i32, i32
  }
  func.func @transform_5(%arg0: i32) -> (i32, i32) {
    %c0_i32 = arith.constant 0 : i32
    %c0_i32_0 = arith.constant 0 : i32
    return %arg0, %c0_i32 : i32, i32
  }
}

</mosaic_0001>

<bundles_post_ra>
// kernel: tpu_custom_call.1
= control target key start
LH: loop header
LB: loop body
LE: loop exit
PB: predicated region body
PF: predicated region fallthrough
CT: control target
= control target key end

     0   :  { %v383_v1 = vmov 0.0   ;;  %vm384_vm0 = vmmov 0   ;;  %s485_s0 = inlined_call_operand.vmem [shape: f32[8,128], index: 0, kind: input, shape index: {}]   ;;  %s486_s1 = inlined_call_operand.vmem [shape: bf16[128,128], index: 1, kind: input, shape index: {}]   ;;  %s487_s2 = inlined_call_operand.vmem [shape: f32[1,128], index: 2, kind: input, shape index: {}]   ;;  %s488_s3 = inlined_call_operand.vmem [shape: bf16[128,12], index: 3, kind: input, shape index: {}]   ;;  %s489_s4 = inlined_call_operand.vmem [shape: f32[1,12], index: 4, kind: input, shape index: {}]   ;;  %s490_s5 = inlined_call_operand.hbm [shape: f32[8,12], index: 5, kind: output, shape index: {}]  }
   0x1   :  { %v343_v0 = vld [vmem:[%s486_s1] sm:$0xff]   ;;  %300 = vmatprep.subr.bf16.mxu0 %v383_v1  ;;  %320 = vmatprep.subr.bf16.mxu1 %v383_v1  ;;  %v344_v2 = vld [vmem:[%s486_s1 + $0x8] sm:$0xff]   ;;  %v345_v3 = vld [vmem:[%s486_s1 + $0x10] sm:$0xff]  }
   0x2   :  { %301 = vmatpush3.bf16.msra.mxu0 %v343_v0  ;;  %316 = vmatprep.mubr.msk.bf16.mxu0 %vm384_vm0, %v383_v1  ;;  %v351_v4 = vld [vmem:[%s488_s3] sm:$0xff]   ;;  %v346_v5 = vld [vmem:[%s486_s1 + $0x18] sm:$0xff]   ;;  %v352_v6 = vld [vmem:[%s488_s3 + $0x8] sm:$0xff]  }
   0x3   :  { %302 = vmatprep.subr.bf16.mxu0 %v383_v1  ;;  %336 = vmatprep.mubr.msk.bf16.mxu1 %vm384_vm0, %v383_v1  ;;  %v347_v7 = vld [vmem:[%s486_s1 + $0x20] sm:$0xff]   ;;  %v353_v8 = vld [vmem:[%s488_s3 + $0x10] sm:$0xff]  }
   0x4   :  { %321 = vmatpush3.bf16.msra.mxu1 %v351_v4 }
   0x5   :  { %322 = vmatprep.subr.bf16.mxu1 %v383_v1 }
   0x6   :  { %303 = vmatpush3.bf16.msra.mxu0 %v344_v2 }
   0x7   :  { %304 = vmatprep.subr.bf16.mxu0 %v383_v1 }
   0x8   :  { %323 = vmatpush3.bf16.msra.mxu1 %v352_v6 }
   0x9   :  { %324 = vmatprep.subr.bf16.mxu1 %v383_v1 }
   0xa   :  { %305 = vmatpush3.bf16.msra.mxu0 %v345_v3 }
   0xb   :  { %306 = vmatprep.subr.bf16.mxu0 %v383_v1 }
   0xe   :  { %307 = vmatpush3.bf16.msra.mxu0 %v346_v5 }
   0xf   :  { %308 = vmatprep.subr.bf16.mxu0 %v383_v1 }
  0x10   :  { %10 = vsyncpa [#allocation3], 0  ;;  %v348_v9 = vld [vmem:[%s486_s1 + $0x28] sm:$0xff]   ;;  %325 = vmatpush3.bf16.msra.mxu1 %v353_v8  ;;  %v354_v10 = vld [vmem:[%s488_s3 + $0x18] sm:$0xff]   ;;  %s385_s29 = smov [#allocation2]   ;;  %vm248_vm1 = vcmask 97280  }
  0x11   :  { %326 = vmatprep.subr.bf16.mxu1 %v383_v1  ;;  %v349_v11 = vld [vmem:[%s486_s1 + $0x30] sm:$0xff]   ;;  %v355_v12 = vld [vmem:[%s488_s3 + $0x20] sm:$0xff]   ;;  %v350_v13 = vld [vmem:[%s486_s1 + $0x38] sm:$0xff]   ;;  %s256_s30 = sshll.u32 %s385_s29, 4  ;;  %s257_s30 = int_to_ptr.vmem [resolvable:$true] %s256_s30 }
  0x12   :  { %309 = vmatpush3.bf16.msra.mxu0 %v347_v7  ;;  %v22_v14 = vld [vmem:[%s485_s0] sm:$0xff]  ;;  %v356_v15 = vld [vmem:[%s488_s3 + $0x28] sm:$0xff]   ;;  %v357_v17 = vld [vmem:[%s488_s3 + $0x30] sm:$0xff]   ;;  %p364_p1 = scmp.lt.s32.totalorder %s257_s30, %s257_s30 }
  0x13   :  { %310 = vmatprep.subr.bf16.mxu0 %v383_v1  ;;  %v23_v16 = vpack.c.bf16 %v22_v14, %v22_v14  ;;  %v358_v18 = vld [vmem:[%s488_s3 + $0x38] sm:$0xff]   ;;  %v264_v19 = vld [vmem:[%s487_s2] ss:$0 sm:$0xff]  ;;  %s359_s2 = scalar_lea.vmem %s257_s30, 128 }
  0x14   :  { %327 = vmatpush3.bf16.msra.mxu1 %v354_v10  ;;  %v273_v27 = vld [vmem:[%s489_s4] ss:$0 sm:$0xff]  ;;  %p360_p0 = scmp.ne.s32.totalorder %s257_s30, %s359_s2  ;;  %p365_p2 = scmp.lt.s32.totalorder %s359_s2, %s359_s2 }
  0x15   :  { %328 = vmatprep.subr.bf16.mxu1 %v383_v1 }
  0x16   :  { %311 = vmatpush3.bf16.msra.mxu0 %v348_v9  ;;  %p366_p3 = por %p365_p2, %p364_p1 }
  0x17   :  { %312 = vmatprep.subr.bf16.mxu0 %v383_v1 }
  0x18   :  { %329 = vmatpush3.bf16.msra.mxu1 %v355_v12  ;;  %p367_p4 = pnand %p366_p3, %p360_p0 }
  0x19   :  { %330 = vmatprep.subr.bf16.mxu1 %v383_v1 }
  0x1a   :  { %313 = vmatpush3.bf16.msra.mxu0 %v349_v11 }
  0x1b   :  { %314 = vmatprep.subr.bf16.mxu0 %v383_v1 }
  0x1c   :  { %331 = vmatpush3.bf16.msra.mxu1 %v356_v15 }
  0x1d   :  { %332 = vmatprep.subr.bf16.mxu1 %v383_v1 }
  0x1e   :  { %315 = vmatpush3.bf16.msra.mxu0 %v350_v13 }
  0x20   :  { %333 = vmatpush3.bf16.msra.mxu1 %v357_v17 }
  0x21   :  { %317 = vmatmul.mubr.bf16.vlgmr.msra.gmra.mrb[0].mxu0 %v23_v16  ;;  %334 = vmatprep.subr.bf16.mxu1 %v383_v1 }
  0x24   :  { %335 = vmatpush3.bf16.msra.mxu1 %v358_v18 }
  0xf4   :  { %v129_v20 = vpop.f32.mrb[0].mxu0 }
  0xf5   :  { %v130_v21 = vadd.f32 %v264_v19, %v129_v20  ;;  %v318_v22 = vpop.f32.mrb[1].mxu0 }
  0xf6   :  { %v132_v23 = vpop.f32.mrb[2].mxu0 }
  0xf7   :  { %v135_v24 = vmax.f32 %v130_v21, 0.0  ;;  %v319_v25 = vpop.f32.mrb[3].mxu0 }
  0xf9   :  { %v136_v26 = vpack.c.bf16 %v135_v24, %v135_v24 }
  0xfb   :  { %337 = vmatmul.mubr.bf16.vlgmr.msra.gmra.mrb[0].mxu1 %v136_v26 }
 0x1ce   :  { %v242_v28 = vpop.f32.mrb[0].mxu1 }
 0x1cf   :  { %v243_v29 = vadd.f32 %v273_v27, %v242_v28  ;;  %v338_v30 = vpop.f32.mrb[1].mxu1 }
 0x1d0   :  { %v245_v31 = vpop.f32.mrb[2].mxu1 }
 0x1d1   :  { %v339_v32 = vpop.f32.mrb[3].mxu1  ;;  %249 = vst.msk [vmem:[#allocation2] sm:$0xff] %vm248_vm1, %v243_v29 }
 0x1d2   :  { %370 = shalt.err (!%p367_p4)
}
 0x1d3   :  { %s371_s4 = scalar_lea.hbm %s490_s5, 128 }
 0x1d4   :  { %p372_p5 = scmp.ne.s32.totalorder %s490_s5, %s371_s4  ;;  %p375_p6 = scmp.lt.u32.totalorder %s371_s4, %s490_s5 }
 0x1d6   :  { %p377_p7 = pnand %p375_p6, %p372_p5 }
 0x1d8   :  { %380 = shalt.err (!%p377_p7)
}
 0x1d9   :  { %259 = dma.vmem_to_hbm [thread:$0]  %s257_s30, 128, %s490_s5, [#allocation3]  }
 0x1da   :  { %381 = dma.done.wait [#allocation3], 128  }
 0x1db   :  { %382 = vsyncadd [#allocation3], 4294967168 }
 0x1dc   :  { %263 = vsyncpa [#allocation3], 1 }

</bundles_post_ra>
